<compile_context>
chip_gen: v5e
topology: v5e:2x2
jax: 0.10.0
libtpu: 0.0.40
codegen_flags: <defaults>
</compile_context>

<pallas_src>
import functools

import jax
import jax.numpy as jnp
from jax import lax
from jax.experimental import pallas as pl
from jax.experimental.pallas import tpu as pltpu


# ----------------------------------------------------------------------------
# Pass 1: normalize + scale-fold + bf16 cast (one streaming pass over HBM).
# ----------------------------------------------------------------------------
def _normalize_kernel(x_ref, o_ref, *, scale):
    """x_ref: (1, Tn, D) raw embeddings of group pl.program_id(0).
    o_ref: (1, Tn, D) bf16, L2-normalized; anchors (group 0) also carry `scale`.
    """
    x = x_ref[...].astype(jnp.float32)
    # torch.nn.functional.normalize(x, p=2, dim=1) == x / max(||x||, 1e-12)
    #   == x * rsqrt(max(sum(x^2), 1e-24)); rsqrt runs on the EUP slot.
    inv = lax.rsqrt(jnp.maximum(jnp.sum(x * x, axis=-1, keepdims=True), 1e-24))
    # Fold `scale` into the anchor group only (O(N*D) once, instead of an
    # O(N*M) multiply on the score matrix later).
    s = jnp.where(pl.program_id(0) == 0, jnp.float32(scale), jnp.float32(1.0))
    o_ref[...] = (x * (inv * s)).astype(o_ref.dtype)


# ----------------------------------------------------------------------------
# Pass 2: tiled scores + streaming softmax cross-entropy.
# ----------------------------------------------------------------------------
def _mnr_loss_kernel(a_ref, b_ref, loss_ref, l_sc, diag_sc, *, scale):
    """One grid step: anchor row tile r  x  candidate tile c.

    a_ref:    (T, D) bf16 anchors, L2-normalized with `scale` folded in.
    b_ref:    (T, D) bf16 candidates (group 1 + c // Cb, row block c % Cb),
              L2-normalized.
    loss_ref: (1, T) f32 per-anchor loss row, written once at the last step.
    l_sc:     (1, T) f32 running sum of exp(scores - scale).
    diag_sc:  (1, T) f32 positive-pair (diagonal) score.
    """
    r = pl.program_id(0)
    c = pl.program_id(1)

    @pl.when(c == 0)
    def _init():
        l_sc[...] = jnp.zeros_like(l_sc)
        diag_sc[...] = jnp.zeros_like(diag_sc)

    # Transposed score tile: scores_t[j, i] = scale * cos_sim(anchor i, cand j).
    # Anchors live along the LANE axis so per-anchor reductions come out
    # lane-major as (1, T).  NT contraction (last dims of both operands) is the
    # standard flash-attention pattern and lowers without an explicit transpose
    # of the (T, D) tile.
    # TODO(synk): if a bundle profile ever shows vxpose on this dot, have pass 1
    # write candidates transposed as (G, D, N) instead.
    scores_t = lax.dot_general(
        b_ref[...], a_ref[...],
        dimension_numbers=(((1,), (1,)), ((), ())),
        preferred_element_type=jnp.float32)                    # (Tc, T) f32

    # Static max = scale: |scores| <= scale since both operands are
    # L2-normalized, so exp(scores - scale) lies in (0, ~1] -> no overflow and
    # no underflow-to-zero in f32 (>= exp(-2*scale) ~ 4e-18 for scale=20).
    l_sc[...] += jnp.sum(jnp.exp(scores_t - scale), axis=0, keepdims=True)

    # The label (positive-pair) column for anchor row i is candidate row i of
    # group 1, i.e. candidate block c == r.  Take it from the same bf16 score
    # tile as the LSE for internal consistency; runs once per row tile.
    @pl.when(c == r)
    def _diag():
        jj = lax.broadcasted_iota(jnp.int32, scores_t.shape, 0)
        ii = lax.broadcasted_iota(jnp.int32, scores_t.shape, 1)
        diag_sc[...] = jnp.sum(jnp.where(jj == ii, scores_t, 0.0),
                               axis=0, keepdims=True)

    # Finalize this row tile after all candidate blocks have been folded in:
    #   CE(row i) = logsumexp(scores[i, :]) - scores[i, i]
    #             = scale + log(sum_j exp(scores[i, j] - scale)) - diag[i]
    @pl.when(c == pl.num_programs(1) - 1)
    def _finalize():
        loss_ref[...] = scale + jnp.log(l_sc[...]) - diag_sc[...]


# ----------------------------------------------------------------------------
# Tiling helpers.
# ----------------------------------------------------------------------------
def _pick_row_tile(n, target):
    """Largest divisor of n that is <= target, preferring multiples of 128
    (lane-aligned output / MXU tiles), then multiples of 8, else n itself."""
    best8 = None
    for cand in range(min(n, target), 0, -1):
        if n % cand:
            continue
        if cand == n or cand % 128 == 0:
            return cand
        if best8 is None and cand % 8 == 0:
            best8 = cand
    return best8 if best8 is not None else n


def _row_tile_target():
    """Generation-aware anchor-tile target (past the HBM roofline knee for
    bf16 candidate re-streaming)."""
    try:
        kind = jax.devices()[0].device_kind.lower()
    except Exception:
        return 512
    if "v6" in kind:
        return 1024        # worst FLOPs:HBM ratio -> biggest tiles
    if "v5" in kind:
        return 512
    return 512             # v7x (only 64 MiB VMEM) and anything else


# ----------------------------------------------------------------------------
# Public wrapper.
# ----------------------------------------------------------------------------
def multiple_negatives_ranking_loss(sentence_features, scale: float = 20.0,
                                    block_rows: int | None = None):
    """sentence_features: (G, N, D). Group 0 = anchors, groups 1..G-1 = candidates."""
    g, n, d = sentence_features.shape
    assert g >= 2, "need at least (anchor, positive) groups"

    # ---- pass 1: normalized bf16 embeddings (scale folded into anchors) ----
    tn = _pick_row_tile(n, 256)
    feats_n = pl.pallas_call(
        functools.partial(_normalize_kernel, scale=float(scale)),
        out_shape=jax.ShapeDtypeStruct((g, n, d), jnp.bfloat16),
        grid=(g, n // tn),
        in_specs=[pl.BlockSpec((1, tn, d), lambda gi, i: (gi, i, 0))],
        out_specs=pl.BlockSpec((1, tn, d), lambda gi, i: (gi, i, 0)),
        compiler_params=pltpu.CompilerParams(
            dimension_semantics=("parallel", "parallel")),
    )(sentence_features)

    # ---- pass 2: tiled scores + streaming softmax cross-entropy ----
    if block_rows is not None:
        t = int(block_rows)
        assert n % t == 0, "row tile must divide the batch"
    else:
        t = _pick_row_tile(n, _row_tile_target())
        # Keep >= 2 row blocks when the batch allows it so both v7x TensorCores
        # get work through the "parallel" row axis.
        if n // t < 2 and n >= 256:
            t = _pick_row_tile(n, max(t // 2, 128))
    row_blocks = n // t                       # blocks along the anchor axis
    blocks_per_group = row_blocks             # candidate blocks per group
    cand_blocks = (g - 1) * blocks_per_group  # flattened candidate axis

    kernel = functools.partial(_mnr_loss_kernel, scale=float(scale))
    per_row_loss = pl.pallas_call(
        kernel,
        out_shape=jax.ShapeDtypeStruct((1, n), jnp.float32),
        grid=(row_blocks, cand_blocks),
        in_specs=[
            # Anchors: group 0, row block r (bf16, pre-normalized, scale folded).
            pl.BlockSpec((pl.Squeezed(), t, d), lambda r, c: (0, r, 0)),
            # Candidates: group 1 + c // Cb, row block c % Cb — DMA'd straight
            # from the (G, N, D) buffer, no HBM concat/reshape.
            pl.BlockSpec((pl.Squeezed(), t, d),
                         lambda r, c: (1 + c // blocks_per_group,
                                       c % blocks_per_group, 0)),
        ],
        # Lane-dense per-anchor loss row (no masked vst on a last-dim-1 output).
        out_specs=pl.BlockSpec((1, t), lambda r, c: (0, r)),
        scratch_shapes=[
            pltpu.VMEM((1, t), jnp.float32),   # running sum of exp(s - scale)
            pltpu.VMEM((1, t), jnp.float32),   # positive-pair (diagonal) score
        ],
        compiler_params=pltpu.CompilerParams(
            dimension_semantics=("parallel", "arbitrary"),
            vmem_limit_bytes=64 << 20),
    )(feats_n, feats_n)

    # CrossEntropyLoss(reduction='mean') over labels arange(N).
    return jnp.mean(per_row_loss)


# ----------------------------------------------------------------------------
# Pure-JAX f32 reference (matches the PyTorch module).
# ----------------------------------------------------------------------------
def _reference_loss(sentence_features, scale: float = 20.0):
    g, n, d = sentence_features.shape
    a = sentence_features[0]
    b = sentence_features[1:].reshape((g - 1) * n, d)
    a_n = a / jnp.maximum(jnp.linalg.norm(a, axis=1, keepdims=True), 1e-12)
    b_n = b / jnp.maximum(jnp.linalg.norm(b, axis=1, keepdims=True), 1e-12)
    scores = (a_n @ b_n.T) * scale
    lse = jax.scipy.special.logsumexp(scores, axis=1)
    diag = scores[jnp.arange(n), jnp.arange(n)]
    return jnp.mean(lse - diag)


if __name__ == "__main__":
    # Small shapes: G=3 groups (anchor, positive, one hard-negative set),
    # batch N=8 sentence pairs, hidden D=32.
    G, N, D = 3, 8, 32
    key = jax.random.PRNGKey(0)
    sentence_features = jax.random.normal(key, (G, N, D), dtype=jnp.float32)

    loss = multiple_negatives_ranking_loss(sentence_features, scale=20.0)
    loss = jax.block_until_ready(loss)

    ref = _reference_loss(sentence_features, scale=20.0)
    # bf16 MXU operands lose ~3 decimal digits on the similarities -> loosened tolerance.
    assert jnp.allclose(loss, ref, rtol=2e-2, atol=3e-2), (loss, ref)

    print("KERNEL_OK")
</pallas_src>

<mosaic_0001>
module attributes {stable_mosaic.version = 11 : i64} {
  func.func @_normalize_kernel(%arg0: i32, %arg1: i32, %arg2: memref<1x8x32xf32, #tpu.memory_space<vmem>>, %arg3: memref<1x8x32xbf16, #tpu.memory_space<vmem>>) attributes {dimension_semantics = [#tpu.dimension_semantics<parallel>, #tpu.dimension_semantics<parallel>], iteration_bounds = array<i64: 3, 1>, scalar_prefetch = 0 : i64, scratch_operands = 0 : i64, tpu.core_type = #tpu.core_type<tc>, window_params = [{transform_indices = @transform_0, window_bounds = array<i64: 1, 8, 32>}, {transform_indices = @transform_1, window_bounds = array<i64: 1, 8, 32>}]} {
    %c0 = arith.constant 0 : index
    %c0_0 = arith.constant 0 : index
    %c0_1 = arith.constant 0 : index
    %0 = vector.load %arg2[%c0, %c0_0, %c0_1] : memref<1x8x32xf32, #tpu.memory_space<vmem>>, vector<1x8x32xf32>
    %1 = arith.mulf %0, %0 : vector<1x8x32xf32>
    %cst = arith.constant dense<0.000000e+00> : vector<1x8xf32>
    %2 = vector.multi_reduction <add>, %1, %cst [2] : vector<1x8x32xf32> to vector<1x8xf32>
    %3 = vector.shape_cast %2 : vector<1x8xf32> to vector<1x8x1xf32>
    %cst_2 = arith.constant 1.000000e-24 : f32
    %4 = vector.broadcast %cst_2 : f32 to vector<1x8x1xf32>
    %5 = arith.maximumf %3, %4 : vector<1x8x1xf32>
    %6 = math.rsqrt %5 : vector<1x8x1xf32>
    %c0_i32 = arith.constant 0 : i32
    %7 = arith.cmpi eq, %arg0, %c0_i32 : i32
    %cst_3 = arith.constant 2.000000e+01 : f32
    %cst_4 = arith.constant 1.000000e+00 : f32
    %8 = arith.select %7, %cst_3, %cst_4 : f32
    %9 = vector.broadcast %8 : f32 to vector<1x8x1xf32>
    %10 = arith.mulf %6, %9 : vector<1x8x1xf32>
    %11 = vector.broadcast %10 : vector<1x8x1xf32> to vector<1x8x32xf32>
    %12 = arith.mulf %0, %11 : vector<1x8x32xf32>
    %13 = arith.truncf %12 : vector<1x8x32xf32> to vector<1x8x32xbf16>
    %c0_5 = arith.constant 0 : index
    %c0_6 = arith.constant 0 : index
    %c0_7 = arith.constant 0 : index
    %14 = vector.load %arg3[%c0_5, %c0_6, %c0_7] : memref<1x8x32xbf16, #tpu.memory_space<vmem>>, vector<1x8x32xbf16>
    tpu.vector_store %arg3[%c0_5, %c0_6, %c0_7], %13 {strides = array<i32>} : memref<1x8x32xbf16, #tpu.memory_space<vmem>>, vector<1x8x32xbf16>,
    return
  }
  func.func @transform_0(%arg0: i32, %arg1: i32) -> (i32, i32, i32) {
    %c0_i32 = arith.constant 0 : i32
    %c0_i32_0 = arith.constant 0 : i32
    return %arg0, %arg1, %c0_i32 : i32, i32, i32
  }
  func.func @transform_1(%arg0: i32, %arg1: i32) -> (i32, i32, i32) {
    %c0_i32 = arith.constant 0 : i32
    %c0_i32_0 = arith.constant 0 : i32
    return %arg0, %arg1, %c0_i32 : i32, i32, i32
  }
}

</mosaic_0001>

<bundles_post_ra>
// kernel: tpu_custom_call.1
= control target key start
LH: loop header
LB: loop body
LE: loop exit
PB: predicated region body
PF: predicated region fallthrough
CT: control target
= control target key end

     0   :  { %6 = vsyncpa [#allocation3], 0  ;;  %s594_s0 = inlined_call_operand.hbm [shape: f32[3,8,32], index: 0, kind: input, shape index: {}]   ;;  %s595_s1 = inlined_call_operand.hbm [shape: bf16[3,8,32], index: 1, kind: output, shape index: {}]  }
   0x1   :  { %8 = vsyncpa [#allocation3 + $0x1], 0 }
   0x2   :  { %9 = vsyncpa [#allocation4], 0 }
   0x3   :  { %11 = vsyncpa [#allocation4 + $0x1], 0  ;;  %s474_s6 = smov 0   ;;  %s476_s7 = smov 0  }
   0x4   :  { %s478_s8 = smov 0   ;;  %s480_s9 = smov 0  }
   0x5   :  { %s482_s10 = smov 0   ;;  %s484_s11 = smov 0  }
   0x6 LB: > { %s273_s12 = sadd.s32 4294967295, %s462_s11   ;;  %s274_s13 = sadd.s32 4294967294, %s462_s11   ;;  %s462_s11 = sphi %s484_s11, %s17_s11   ;;  %s458_s10 = sphi %s482_s10, %s604_s10   ;;  %s454_s9 = sphi %s480_s9, %s603_s9   ;;  %s450_s8 = sphi %s478_s8, %s602_s8   ;;  %s446_s7 = sphi %s476_s7, %s601_s7   ;;  %s442_s6 = sphi %s474_s6, %s600_s6  }
   0x7   : > { %s29_s14 = sadd.s32 1, %s458_s10  ;;  %s38_s15 = sadd.s32 1, %s450_s8 }
   0x8   : > { %p31_p0 = scmp.ge.s32.totalorder %s29_s14, 3  ;;  %p45_p1 = scmp.ne.s32.totalorder %s450_s8, %s446_s7 }
   0x9   : > { %p46_p2 = scmp.eq.s32.totalorder %s462_s11, 0  ;;  %p51_p3 = scmp.ne.s32.totalorder %s446_s7, %s442_s6 }
   0xa   : > { %s606_s14 = smov (%p31_p0, %s29_s14), 0  ;;  %p52_p5 = scmp.eq.s32.totalorder %s273_s12, 0 }
   0xb   : > { %p515_p4 = por %p46_p2, %p45_p1  ;;  %s33_s17 = ssub.s32 %s458_s10, %s606_s14 }
   0xc   : > { %p77_p6 = scmp.eq.s32.totalorder %s273_s12, 2  ;;  %p36_p7 = scmp.eq.s32.totalorder %s33_s17, 0 }
   0xd   : > { %p521_p8 = por %p52_p5, %p51_p3  ;;  %p83_p10 = scmp.eq.s32.totalorder %s274_s13, 2 }
   0xe   : > { %p525_p9 = por %p77_p6, %p45_p1  ;;  %p298_p12 = scmp.lt.s32.totalorder %s462_s11, 3 }
   0xf   : > { %s530_s20 = scalar_select %p36_p7, %s450_s8, %s38_s15  }
  0x10   : > { %p532_p11 = por %p83_p10, %p51_p3  ;;  %s103_s22 = sand.u32 1, %s450_s8  }
  0x11   : > { %s277_s23 = sshll.u32 %s103_s22, 3  ;;  %s278_s24 = sshll.u32 %s458_s10, 3 }
  0x12   : > { %s112_s27 = scalar_lea.hbm %s594_s0, %s278_s24  ;;  %s107_s28 = scalar_lea.vmem [#allocation2], %s277_s23 }
  0x13   : > { %s116_s29 = sshll.u32 %s107_s28, 4  ;;  %s114_s30 = sshll.u32 %s112_s27, 4  ;;  %s117_s29 = int_to_ptr.vmem [resolvable:$true] %s116_s29  ;;  %s115_s30 = int_to_ptr.hbm [resolvable:$true] %s114_s30 }
  0x14   : > { %p291_p13 = pnand %p298_p12, %p515_p4  ;;  %p279_p0 = scmp.ge.s32.totalorder %s462_s11, 1 }
  0x15   : > { %p121_p1 = scmp.lt.s32.totalorder %s462_s11, 4  ;;  %s104_s2 = scalar_lea.sflag [#allocation3], %s103_s22 }
  0x16   : > { %293 = dma.hbm_to_vmem [thread:$0]  (!%p291_p13), %s115_s30, 128, %s117_s29, %s104_s2  }
  0x17   : > { %p122_p2 = pnand %p279_p0, %p121_p1 }
  0x18   : > { %s547_s3 = sand.u32 (!%p122_p2), 1, %s446_s7  }
  0x19   : > { %125 = sbr.rel (%p122_p2) target bundleno = 180 (0xb4), region = 24  ;;  %s280_s4 = sshll.u32 (!%p122_p2), %s547_s3, 3 }
  0x1a   : > { %s128_s5 = scalar_lea.sflag (!%p122_p2), [#allocation3], %s547_s3  ;;  %s131_s12 = scalar_lea.vmem (!%p122_p2), [#allocation2], %s280_s4 }
  0x1e   : > { %433 = dma.done.wait (%p521_p8), %s128_s5, 128  }
  0x1f   : > { %435 = vsyncadd (%p521_p8), %s128_s5, 4294967168  ;;  %v151_v0 = vld [vmem:[%s131_s12] sm:$0xff]  ;;  %vm153_vm0 = vcmask 261120   ;;  %p168_p3 = scmp.eq.s32.totalorder %s454_s9, 0  ;;  %s281_s15 = sshll.u32 %s547_s3, 2  ;;  %vm174_vm4 = vcmask 257024  }
  0x20   : > { %v152_v1 = vmul.f32 %v151_v0, %v151_v0  ;;  %s283_s16 = sshll.u32 %s454_s9, 2  ;;  %s150_s23 = scalar_lea.vmem [#allocation5], %s281_s15 }
  0x21   : > { %s169_s13 = scalar_select %p168_p3, 20.0, 1.0 }
  0x22   : > { %v154_v2 = vsel %vm153_vm0, %v152_v1, 0.0  ;;  %s188_s22 = scalar_lea.hbm %s595_s1, %s283_s16  ;;  %s190_s24 = sshll.u32 %s150_s23, 4  ;;  %s191_s24 = int_to_ptr.vmem [resolvable:$true] %s190_s24 }
  0x23   : > { %155 = vadd.xlane.f32.xlu0 %v154_v2  ;;  %v170_v11 = vstv %s169_s13  ;;  %s192_s25 = sshll.u32 %s188_s22, 4  ;;  %s177_s9 = scalar_lea.sflag [#allocation4], %s547_s3  ;;  %s193_s25 = int_to_ptr.hbm [resolvable:$true] %s192_s25 }
  0x24   : > { %s394_s26 = sshra.s32 %s193_s25, 4  ;;  %s400_s30 = scalar_lea.hbm %s595_s1, 12  ;;  %s395_s26 = int_to_ptr.hbm [resolvable:$true] %s394_s26 }
  0x25   : > { %s396_s27 = scalar_lea.hbm %s395_s26, 4  ;;  %p401_p7 = scmp.lt.s32.totalorder %s395_s26, %s595_s1 }
  0x26   : > { %p397_p4 = scmp.ne.s32.totalorder %s395_s26, %s396_s27  ;;  %p402_p8 = scmp.lt.s32.totalorder %s400_s30, %s396_s27 }
  0x28   : > { %p398_p5 = pnand %p397_p4, %p525_p9  ;;  %p403_p10 = por %p402_p8, %p401_p7 }
  0x2a   : > { %p399_p6 = pneg %p398_p5 }
  0x2c   : > { %p404_p12 = pnand %p403_p10, %p399_p6 }
  0x96   : > { %v156_v3 = vpop.xlane.xlu0 %155 }
  0x97   : > { %v157_v4 = vmax.f32 %v156_v3, 1e-24 }
  0x99   : > { %348 = vrsqrt.f32 %v157_v4  ;;  %vm164_vm2 = vweird.f32 %v157_v4 }
  0x9f   : > { %v349_v5 = vpop.eup %348 }
  0xa0   : > { %v159_v6 = vmul.f32 %v349_v5, %v157_v4  ;;  %vm165_vm1 = vweird.f32 %v349_v5 }
  0xa1   : > { %vm166_vm3 = vmor %vm164_vm2, %vm165_vm1 }
  0xa2   : > { %v160_v7 = vmul.f32 %v349_v5, %v159_v6 }
  0xa4   : > { %v161_v8 = vmul.f32 0.5, %v160_v7 }
  0xa6   : > { %v162_v9 = vsub.f32 1.5, %v161_v8 }
  0xa8   : > { %v163_v10 = vmul.f32 %v349_v5, %v162_v9 }
  0xaa   : > { %v167_v12 = vsel %vm166_vm3, %v349_v5, %v163_v10 }
  0xab   : > { %v171_v13 = vmul.f32 %v170_v11, %v167_v12 }
  0xad   : > { %v172_v14 = vmul.f32 %v171_v13, %v151_v0 }
  0xaf   : > { %v173_v15 = vpack.c.bf16 %v172_v14, %v172_v14 }
  0xb1   : > { %175 = vst.msk [vmem:[%s150_s23] sm:$0xf] %vm174_vm4, %v173_v15 }
  0xb2   : > { %407 = shalt.err (!%p404_p12)
}
  0xb3   : > { %288 = dma.vmem_to_hbm [thread:$0]  (%p525_p9), %s191_s24, 64, %s193_s25, %s177_s9  }
  0xb4 PF: > { %p299_p13 = scmp.ge.s32.totalorder %s462_s11, 2  ;;  %s204_s3 = sand.u32 1, %s442_s6  }
  0xb5   : > { %s205_s5 = scalar_lea.sflag [#allocation4], %s204_s3 }
  0xb6   : > { %p295_p0 = pnand %p299_p13, %p532_p11 }
  0xb8   : > { %p296_p1 = pneg %p295_p0 }
  0xba   : > { %437 = dma.done.wait (%p296_p1), %s205_s5, 64  }
  0xbb   : > { %439 = vsyncadd (%p296_p1), %s205_s5, 4294967232  ;;  %s17_s11 = sadd.s32 1, %s462_s11   ;;  %s600_s6 = smov %s446_s7 }
  0xbc   : > { %p14_p2 = scmp.ge.s32.totalorder %s17_s11, 5   ;;  %s601_s7 = smov %s450_s8 }
  0xbd   : > { %s602_s8 = smov %s530_s20  ;;  %s603_s9 = smov %s458_s10 }
  0xbe   : > { %s604_s10 = smov %s606_s14  ;;  %16 = sbr.rel (!%p14_p2) target bundleno = 6 (0x6), region = 69 }
  0xc3   :  { %211 = vsyncpa [#allocation3], 1 }
  0xc4   :  { %213 = vsyncpa [#allocation3 + $0x1], 1 }
  0xc5   :  { %214 = vsyncpa [#allocation4], 1 }
  0xc6   :  { %216 = vsyncpa [#allocation4 + $0x1], 1 }

</bundles_post_ra>
